<compile_context>
chip_gen: v5e
topology: v5e:2x2
jax: 0.10.0
libtpu: 0.0.40
codegen_flags: <defaults>
</compile_context>

<pallas_src>
import jax
import jax.numpy as jnp
import numpy as np
from jax.experimental import pallas as pl
from jax.experimental.pallas import tpu as pltpu


def _cdiv(a, b):
    return -(-a // b)


def _round_up(x, m):
    return ((x + m - 1) // m) * m


def _vmem_budget_bytes():
    """Per-kernel VMEM budget: a fraction of the real per-core capacity."""
    try:
        cap = int(pltpu.get_tpu_info().vmem_capacity_bytes)
        return int(cap * 0.65)
    except Exception:
        pass
    try:
        kind = jax.devices()[0].device_kind.lower()
    except Exception:
        kind = ""
    if "v5" in kind or "v6" in kind:
        return 80 * 1024 * 1024          # 128 MiB physical VMEM
    return 40 * 1024 * 1024              # v7x (64 MiB per TC) / unknown: stay safe


def _row_align(x_itemsize, out_itemsize):
    """Row-tile granularity: 8 rows for 32-bit, 16 for 16-bit (sublane packing)."""
    return 8 * (4 // min(x_itemsize, out_itemsize, 4))


def _pick_block_bv(bv, per_row_bytes, fixed_bytes, budget, align):
    """Balanced row tile: multiple of `align`, fits the VMEM budget, and gives
    >= 2 grid steps (target 4) when bv allows — pipeline overlap + v7x's 2 TCs."""
    if bv <= align:
        return bv
    avail = max(budget - fixed_bytes, align * per_row_bytes)
    cap = max(align, (avail // per_row_bytes) // align * align)
    cap = min(cap, max(align, (bv // align) * align))
    max_steps = _cdiv(bv, align)
    want_steps = min(4, max_steps)
    n = max(_cdiv(bv, cap), want_steps)
    blk = _round_up(_cdiv(bv, n), align)
    return max(align, min(blk, cap))


def _plan_tiles(bv, dp, t_pad, x_itemsize, out_itemsize, budget,
                block_bv=None, block_k=None):
    """Choose (block_bv, block_k). block_k=None => fully VMEM-resident weight;
    otherwise the contraction dim dp is streamed in (block_k, t_pad) tiles."""
    w_item = 2                                    # fused weight is bf16
    align = _row_align(x_itemsize, out_itemsize)

    if block_k is not None:
        assert block_k == dp or (dp % block_k == 0 and block_k % 128 == 0), (
            "block_k must divide dp and be a multiple of 128 (or equal dp)")
    else:
        fixed_res = dp * t_pad * w_item + t_pad * 4           # Buffered(1) resident
        per_row_res = 2 * dp * x_itemsize + 2 * t_pad * out_itemsize
        if fixed_res + align * per_row_res <= budget:
            block_k = None                                    # resident path
        elif dp % 128 == 0:
            # contraction split: largest multiple-of-128 divisor of dp that fits
            best = 128
            for tk in range(128, dp + 1, 128):
                if dp % tk:
                    continue
                fixed = 2 * tk * t_pad * w_item + t_pad * 4
                per_row = (2 * tk * x_itemsize + 2 * t_pad * out_itemsize
                           + t_pad * 4)
                if fixed + align * per_row <= budget:
                    best = tk
            block_k = best
        else:
            # TODO(synk): dp not lane-tileable and weight over budget — resident
            # best effort (may exceed the soft VMEM budget).
            block_k = None

    if block_k is None:
        fixed = dp * t_pad * w_item + t_pad * 4
        per_row = 2 * dp * x_itemsize + 2 * t_pad * out_itemsize
    else:
        fixed = 2 * block_k * t_pad * w_item + t_pad * 4
        per_row = 2 * block_k * x_itemsize + 2 * t_pad * out_itemsize + t_pad * 4

    if block_bv is None:
        block_bv = _pick_block_bv(bv, per_row, fixed, budget, align)
    else:
        block_bv = bv if block_bv >= bv else min(_round_up(block_bv, align), bv)
    return block_bv, block_k


def _head_kernel_resident(x_ref, w_ref, b_ref, o_ref):
    # x:(TB,DP) input dtype, w:(DP,T) bf16 resident, b:(1,T) f32, o:(TB,T) out dtype.
    x = x_ref[...].astype(jnp.bfloat16)      # in-VMEM cast (no-op if x is bf16)
    acc = jnp.dot(x, w_ref[...], preferred_element_type=jnp.float32)
    o_ref[...] = (acc + b_ref[...]).astype(o_ref.dtype)


def _head_kernel_ksplit(x_ref, w_ref, b_ref, o_ref, acc_ref):
    # grid = (bv tiles [parallel], dp tiles [arbitrary, innermost]).
    k = pl.program_id(1)

    @pl.when(k == 0)
    def _():
        acc_ref[...] = jnp.zeros_like(acc_ref)

    x = x_ref[...].astype(jnp.bfloat16)
    acc_ref[...] += jnp.dot(x, w_ref[...], preferred_element_type=jnp.float32)

    @pl.when(k == pl.num_programs(1) - 1)
    def _():
        o_ref[...] = (acc_ref[...] + b_ref[...]).astype(o_ref.dtype)


def fused_head_matmul(x2d, w_fused, b_fused, *, block_bv=None, block_k=None,
                      out_dtype=jnp.bfloat16):
    """y = cast_bf16(x2d) @ w_fused + b_fused, row-tiled; optional dp split."""
    bv, dp = x2d.shape
    dp2, t_pad = w_fused.shape
    assert dp == dp2 and t_pad % 128 == 0 and b_fused.shape == (1, t_pad)

    budget = _vmem_budget_bytes()
    x_item = x2d.dtype.itemsize
    out_item = np.dtype(out_dtype).itemsize
    block_bv, block_k = _plan_tiles(bv, dp, t_pad, x_item, out_item, budget,
                                    block_bv=block_bv, block_k=block_k)

    try:   # advisory hint so XLA schedules neighbouring ops around the call
        cost = pl.CostEstimate(
            flops=2 * bv * dp * t_pad, transcendentals=0,
            bytes_accessed=(bv * dp * x_item + dp * t_pad * 2 + t_pad * 4
                            + bv * t_pad * out_item))
    except Exception:
        cost = None

    def build(use_buffered):
        def const_spec(shape, index_map):
            if use_buffered:   # constant index_map: never re-fetched, 1 buffer
                return pl.BlockSpec(shape, index_map,
                                    pipeline_mode=pl.Buffered(1))
            return pl.BlockSpec(shape, index_map)

        wbuf = 1 if use_buffered else 2
        if block_k is None:
            grid = (_cdiv(bv, block_bv),)
            in_specs = [
                pl.BlockSpec((block_bv, dp), lambda i: (i, 0)),   # streamed x
                const_spec((dp, t_pad), lambda i: (0, 0)),        # resident W
                const_spec((1, t_pad), lambda i: (0, 0)),         # resident b
            ]
            out_specs = pl.BlockSpec((block_bv, t_pad), lambda i: (i, 0))
            scratch = []
            kernel = _head_kernel_resident
            sem = ("parallel",)
            est = (wbuf * dp * t_pad * 2 + t_pad * 4
                   + block_bv * (2 * dp * x_item + 2 * t_pad * out_item))
        else:
            grid = (_cdiv(bv, block_bv), dp // block_k)           # reduction last
            in_specs = [
                pl.BlockSpec((block_bv, block_k), lambda i, k: (i, k)),
                pl.BlockSpec((block_k, t_pad), lambda i, k: (k, 0)),
                const_spec((1, t_pad), lambda i, k: (0, 0)),
            ]
            out_specs = pl.BlockSpec((block_bv, t_pad), lambda i, k: (i, 0))
            scratch = [pltpu.VMEM((block_bv, t_pad), jnp.float32)]
            kernel = _head_kernel_ksplit
            sem = ("parallel", "arbitrary")
            est = (2 * block_k * t_pad * 2 + t_pad * 4
                   + block_bv * (2 * block_k * x_item + 2 * t_pad * out_item
                                 + t_pad * 4))
        vmem_limit = int(min(max(est + (8 << 20), 32 << 20), budget + (8 << 20)))
        return pl.pallas_call(
            kernel,
            out_shape=jax.ShapeDtypeStruct((bv, t_pad), out_dtype),
            grid=grid,
            in_specs=in_specs,
            out_specs=out_specs,
            scratch_shapes=scratch,
            compiler_params=pltpu.CompilerParams(
                dimension_semantics=sem, vmem_limit_bytes=vmem_limit),
            cost_estimate=cost,
        )

    try:
        return build(use_buffered=True)(x2d, w_fused, b_fused)
    except Exception:
        # Fallback for Pallas versions without pipeline_mode=pl.Buffered(1);
        # a genuine error re-raises from the default-buffered build too.
        return build(use_buffered=False)(x2d, w_fused, b_fused)


class ConvHeadPallas:
    """JAX/Pallas equivalent of the PyTorch Conv_Head module (inference)."""

    def __init__(self, d_model, patch_num, nf, target_window, head_dropout=0.0,
                 K=4, out_dtype=jnp.bfloat16, key=None):
        assert patch_num % K == 0, "patch_num must be divisible by K"
        assert nf == d_model * (patch_num // K), "nf must equal d_model * patch_num / K"
        self.K = K
        self.d_model = d_model
        self.patch_num = patch_num
        self.nf = nf
        self.target_window = target_window
        self.head_dropout = head_dropout
        self.out_dtype = out_dtype
        # TODO(synk): head_dropout is identity in eval mode; a training-mode mask
        # would need a pltpu.prng_seed/prng_random_bits path and is omitted.

        if key is None:
            key = jax.random.PRNGKey(0)
        k1, k2, k3, k4 = jax.random.split(key, 4)
        fan_in_conv = 1 * K * d_model
        bc = 1.0 / float(fan_in_conv) ** 0.5
        self.conv_w = jax.random.uniform(k1, (d_model, 1, K, d_model),
                                         jnp.float32, -bc, bc)
        self.conv_b = jax.random.uniform(k2, (d_model,), jnp.float32, -bc, bc)
        bl = 1.0 / float(nf) ** 0.5
        self.lin_w = jax.random.uniform(k3, (target_window, nf), jnp.float32, -bl, bl)
        self.lin_b = jax.random.uniform(k4, (target_window,), jnp.float32, -bl, bl)

        # ---- fold conv + flatten + linear into one matmul (exact identity) ----
        P_K = patch_num // K
        conv_w2 = self.conv_w[:, 0]                                    # (oc, k, d)
        lin_w3 = self.lin_w.reshape(target_window, d_model, P_K)       # (t, oc, w)
        w_fused = jnp.einsum("okd,tow->dkwt", conv_w2, lin_w3)         # (d, k, w, t)
        w_fused = w_fused.reshape(d_model * patch_num, target_window)  # q = d*pn + k*P_K + w
        b_fused = self.lin_b + jnp.einsum("tow,o->t", lin_w3, self.conv_b)

        # Lane-dense output: pad target_window to a multiple of 128 only if needed.
        self.t_pad = _round_up(target_window, 128)
        pad_t = self.t_pad - target_window
        self.w_fused = jnp.pad(w_fused, ((0, 0), (0, pad_t))).astype(jnp.bfloat16)
        self.b_fused = jnp.pad(b_fused, (0, pad_t)).reshape(1, self.t_pad).astype(jnp.float32)

    def __call__(self, x, block_bv=None, block_k=None, return_padded=False):
        bs, n_vars, d_model, patch_num = x.shape
        assert d_model == self.d_model and patch_num == self.patch_num
        bv = bs * n_vars
        # Free reshape view: x consumed in its natural (d, p) row-major layout.
        x2d = x.reshape(bv, d_model * patch_num)
        y = fused_head_matmul(x2d, self.w_fused, self.b_fused,
                              block_bv=block_bv, block_k=block_k,
                              out_dtype=self.out_dtype)
        if return_padded:
            return y.reshape(bs, n_vars, self.t_pad)
        if self.t_pad != self.target_window:
            # NOTE: this slice is a separate XLA pass over the padded output;
            # consumers that can take the padded layout should use return_padded.
            y = y[:, :self.target_window]
        return y.reshape(bs, n_vars, self.target_window)

    # Pure-JAX, f32, *unfused* reference mirroring the exact PyTorch op order
    # (permute -> chunk/stack -> flatten -> Conv2d -> reshape -> Linear).
    def reference(self, x):
        bs, n_vars, d_model, patch_num = x.shape
        K, P_K = self.K, patch_num // self.K
        xp = jnp.transpose(x, (0, 1, 3, 2))                    # (bs, n_vars, patch_num, d_model)
        xs = jnp.stack(jnp.split(xp, K, axis=-2), axis=2)      # (bs, n_vars, K, P_K, d_model)
        xi = xs.reshape(bs * n_vars, 1, K, P_K * d_model)      # conv input (N,1,K,P_K*d_model)
        win = xi[:, 0].reshape(bs * n_vars, K, P_K, d_model)   # [n, k, w, d]
        c = (jnp.einsum("nkwd,okd->now", win, self.conv_w[:, 0])
             + self.conv_b[None, :, None])                     # (N, oc, w) == conv out (N,oc,1,w)
        c = c.reshape(bs, n_vars, d_model * P_K)               # PyTorch flatten order (oc, w)
        y = c @ self.lin_w.T + self.lin_b
        return y


if __name__ == "__main__":
    bs, n_vars, K = 8, 4, 4
    target_window = 24
    key = jax.random.PRNGKey(0)
    kx1, kp1, kx2, kp2 = jax.random.split(key, 4)

    # --- Case 1: planner-chosen resident-weight path (balanced 2-step grid) ---
    d_model, patch_num = 16, 8
    nf = d_model * (patch_num // K)
    x1 = jax.random.normal(kx1, (bs, n_vars, d_model, patch_num), jnp.float32)
    head1 = ConvHeadPallas(d_model, patch_num, nf, target_window, K=K, key=kp1)
    out1 = jax.block_until_ready(head1(x1))
    assert out1.shape == (bs, n_vars, target_window)
    ref1 = head1.reference(x1)
    err1 = float(jnp.max(jnp.abs(out1.astype(jnp.float32) - ref1)))
    scale1 = float(jnp.max(jnp.abs(ref1))) + 1e-6
    assert err1 <= 3e-2 * scale1, f"resident path mismatch: err={err1}, scale={scale1}"

    # --- Case 2: contraction-split path forced (dp=256 -> two 128-wide K tiles),
    # exercising the f32 VMEM accumulator init/accumulate/finalize + 2 bv tiles.
    d_model2, patch_num2 = 32, 8
    nf2 = d_model2 * (patch_num2 // K)
    x2 = jax.random.normal(kx2, (bs, n_vars, d_model2, patch_num2), jnp.float32)
    head2 = ConvHeadPallas(d_model2, patch_num2, nf2, target_window, K=K, key=kp2)
    out2 = jax.block_until_ready(head2(x2, block_bv=16, block_k=128))
    assert out2.shape == (bs, n_vars, target_window)
    ref2 = head2.reference(x2)
    err2 = float(jnp.max(jnp.abs(out2.astype(jnp.float32) - ref2)))
    scale2 = float(jnp.max(jnp.abs(ref2))) + 1e-6
    assert err2 <= 3e-2 * scale2, f"ksplit path mismatch: err={err2}, scale={scale2}"

    print("KERNEL_OK")
</pallas_src>

<mosaic_0001>
module attributes {stable_mosaic.version = 11 : i64} {
  func.func @_head_kernel_resident(%arg0: i32, %arg1: memref<16x128xf32, #tpu.memory_space<vmem>>, %arg2: memref<128x128xbf16, #tpu.memory_space<vmem>>, %arg3: memref<1x128xf32, #tpu.memory_space<vmem>>, %arg4: memref<16x128xbf16, #tpu.memory_space<vmem>>) attributes {dimension_semantics = [#tpu.dimension_semantics<parallel>], iteration_bounds = array<i64: 2>, scalar_prefetch = 0 : i64, scratch_operands = 0 : i64, tpu.core_type = #tpu.core_type<tc>, window_params = [{transform_indices = @transform_0, window_bounds = array<i64: 16, 128>}, {pipeline_mode = #tpu.pipeline_mode<synchronous>, transform_indices = @transform_1, window_bounds = array<i64: 128, 128>}, {pipeline_mode = #tpu.pipeline_mode<synchronous>, transform_indices = @transform_2, window_bounds = array<i64: 1, 128>}, {transform_indices = @transform_3, window_bounds = array<i64: 16, 128>}]} {
    %c0 = arith.constant 0 : index
    %c0_0 = arith.constant 0 : index
    %0 = vector.load %arg1[%c0, %c0_0] : memref<16x128xf32, #tpu.memory_space<vmem>>, vector<16x128xf32>
    %1 = arith.truncf %0 : vector<16x128xf32> to vector<16x128xbf16>
    %c0_1 = arith.constant 0 : index
    %c0_2 = arith.constant 0 : index
    %2 = vector.load %arg2[%c0_1, %c0_2] : memref<128x128xbf16, #tpu.memory_space<vmem>>, vector<128x128xbf16>
    %cst = arith.constant dense<0.000000e+00> : vector<16x128xf32>
    %3 = tpu.matmul %1, %2, %cst {dimension_numbers = #tpu.dot_dimension_numbers<[1], [0], [0], [1], [0, 0, 1, 1], [], []>} : vector<16x128xbf16>, vector<128x128xbf16>, vector<16x128xf32> -> vector<16x128xf32>
    %c0_3 = arith.constant 0 : index
    %c0_4 = arith.constant 0 : index
    %4 = vector.load %arg3[%c0_3, %c0_4] : memref<1x128xf32, #tpu.memory_space<vmem>>, vector<1x128xf32>
    %5 = vector.broadcast %4 : vector<1x128xf32> to vector<16x128xf32>
    %6 = arith.addf %3, %5 : vector<16x128xf32>
    %7 = arith.truncf %6 : vector<16x128xf32> to vector<16x128xbf16>
    %c0_5 = arith.constant 0 : index
    %c0_6 = arith.constant 0 : index
    %8 = vector.load %arg4[%c0_5, %c0_6] : memref<16x128xbf16, #tpu.memory_space<vmem>>, vector<16x128xbf16>
    tpu.vector_store %arg4[%c0_5, %c0_6], %7 {strides = array<i32>} : memref<16x128xbf16, #tpu.memory_space<vmem>>, vector<16x128xbf16>,
    return
  }
  func.func @transform_0(%arg0: i32) -> (i32, i32) {
    %c0_i32 = arith.constant 0 : i32
    %c0_i32_0 = arith.constant 0 : i32
    return %arg0, %c0_i32 : i32, i32
  }
  func.func @transform_1(%arg0: i32) -> (i32, i32) {
    %c0_i32 = arith.constant 0 : i32
    %c0_i32_0 = arith.constant 0 : i32
    %c0_i32_1 = arith.constant 0 : i32
    return %c0_i32, %c0_i32_0 : i32, i32
  }
  func.func @transform_2(%arg0: i32) -> (i32, i32) {
    %c0_i32 = arith.constant 0 : i32
    %c0_i32_0 = arith.constant 0 : i32
    %c0_i32_1 = arith.constant 0 : i32
    return %c0_i32, %c0_i32_0 : i32, i32
  }
  func.func @transform_3(%arg0: i32) -> (i32, i32) {
    %c0_i32 = arith.constant 0 : i32
    %c0_i32_0 = arith.constant 0 : i32
    return %arg0, %c0_i32 : i32, i32
  }
}

module attributes {stable_mosaic.version = 11 : i64} {
  func.func @_head_kernel_resident(%arg0: i32, %arg1: memref<16x128xf32, #tpu.memory_space<vmem>>, %arg2: memref<128x128xbf16, #tpu.memory_space<vmem>>, %arg3: memref<1x128xf32, #tpu.memory_space<vmem>>, %arg4: memref<16x128xbf16, #tpu.memory_space<vmem>>) attributes {dimension_semantics = [#tpu.dimension_semantics<parallel>], iteration_bounds = array<i64: 2>, scalar_prefetch = 0 : i64, scratch_operands = 0 : i64, tpu.core_type = #tpu.core_type<tc>, window_params = [{transform_indices = @transform_0, window_bounds = array<i64: 16, 128>}, {pipeline_mode = #tpu.pipeline_mode<synchronous>, transform_indices = @transform_1, window_bounds = array<i64: 128, 128>}, {pipeline_mode = #tpu.pipeline_mode<synchronous>, transform_indices = @transform_2, window_bounds = array<i64: 1, 128>}, {transform_indices = @transform_3, window_bounds = array<i64: 16, 128>}]} {
    %c0 = arith.constant 0 : index
    %c0_0 = arith.constant 0 : index
    %0 = vector.load %arg1[%c0, %c0_0] : memref<16x128xf32, #tpu.memory_space<vmem>>, vector<16x128xf32>
    %1 = arith.truncf %0 : vector<16x128xf32> to vector<16x128xbf16>
    %c0_1 = arith.constant 0 : index
    %c0_2 = arith.constant 0 : index
    %2 = vector.load %arg2[%c0_1, %c0_2] : memref<128x128xbf16, #tpu.memory_space<vmem>>, vector<128x128xbf16>
    %cst = arith.constant dense<0.000000e+00> : vector<16x128xf32>
    %3 = tpu.matmul %1, %2, %cst {dimension_numbers = #tpu.dot_dimension_numbers<[1], [0], [0], [1], [0, 0, 1, 1], [], []>} : vector<16x128xbf16>, vector<128x128xbf16>, vector<16x128xf32> -> vector<16x128xf32>
    %c0_3 = arith.constant 0 : index
    %c0_4 = arith.constant 0 : index
    %4 = vector.load %arg3[%c0_3, %c0_4] : memref<1x128xf32, #tpu.memory_space<vmem>>, vector<1x128xf32>
    %5 = vector.broadcast %4 : vector<1x128xf32> to vector<16x128xf32>
    %6 = arith.addf %3, %5 : vector<16x128xf32>
    %7 = arith.truncf %6 : vector<16x128xf32> to vector<16x128xbf16>
    %c0_5 = arith.constant 0 : index
    %c0_6 = arith.constant 0 : index
    %8 = vector.load %arg4[%c0_5, %c0_6] : memref<16x128xbf16, #tpu.memory_space<vmem>>, vector<16x128xbf16>
    tpu.vector_store %arg4[%c0_5, %c0_6], %7 {strides = array<i32>} : memref<16x128xbf16, #tpu.memory_space<vmem>>, vector<16x128xbf16>,
    return
  }
  func.func @transform_0(%arg0: i32) -> (i32, i32) {
    %c0_i32 = arith.constant 0 : i32
    %c0_i32_0 = arith.constant 0 : i32
    return %arg0, %c0_i32 : i32, i32
  }
  func.func @transform_1(%arg0: i32) -> (i32, i32) {
    %c0_i32 = arith.constant 0 : i32
    %c0_i32_0 = arith.constant 0 : i32
    %c0_i32_1 = arith.constant 0 : i32
    return %c0_i32, %c0_i32_0 : i32, i32
  }
  func.func @transform_2(%arg0: i32) -> (i32, i32) {
    %c0_i32 = arith.constant 0 : i32
    %c0_i32_0 = arith.constant 0 : i32
    %c0_i32_1 = arith.constant 0 : i32
    return %c0_i32, %c0_i32_0 : i32, i32
  }
  func.func @transform_3(%arg0: i32) -> (i32, i32) {
    %c0_i32 = arith.constant 0 : i32
    %c0_i32_0 = arith.constant 0 : i32
    return %arg0, %c0_i32 : i32, i32
  }
}

</mosaic_0001>

<bundles_post_ra>
// kernel: tpu_custom_call.1
= control target key start
LH: loop header
LB: loop body
LE: loop exit
PB: predicated region body
PF: predicated region fallthrough
CT: control target
= control target key end

     0   :  { %8 = vsyncpa [#allocation3], 0  ;;  %s828_s0 = inlined_call_operand.hbm [shape: f32[32,128], index: 0, kind: input, shape index: {}]   ;;  %s829_s1 = inlined_call_operand.hbm [shape: bf16[128,128], index: 1, kind: input, shape index: {}]   ;;  %s830_s2 = inlined_call_operand.vmem [shape: f32[1,128], index: 2, kind: input, shape index: {}]   ;;  %s831_s3 = inlined_call_operand.hbm [shape: bf16[32,128], index: 3, kind: output, shape index: {}]  }
   0x1   :  { %10 = vsyncpa [#allocation3 + $0x1], 0 }
   0x2   :  { %11 = vsyncpa [#allocation6], 0 }
   0x3   :  { %12 = vsyncpa [#allocation4], 0 }
   0x4   :  { %14 = vsyncpa [#allocation4 + $0x1], 0  ;;  %s684_s12 = smov 0   ;;  %s686_s13 = smov 0  }
   0x5   :  { %s688_s14 = smov 0   ;;  %s690_s15 = smov 0  }
   0x6 LB: > { %s705_s16 = sadd.s32 4294967295, %s655_s15   ;;  %s398_s17 = sadd.s32 4294967294, %s655_s15   ;;  %s655_s15 = sphi %s690_s15, %s841_s15   ;;  %s651_s14 = sphi %s688_s14, %s840_s14   ;;  %s647_s13 = sphi %s686_s13, %s839_s13   ;;  %s643_s12 = sphi %s684_s12, %s838_s12  }
   0x7   : > { %p40_p0 = scmp.ne.s32.totalorder %s647_s13, %s643_s12  ;;  %p41_p1 = scmp.eq.s32.totalorder %s705_s16, 0 }
   0x8   : > { %p106_p2 = scmp.eq.s32.totalorder %s705_s16, 1  ;;  %p112_p3 = scmp.eq.s32.totalorder %s398_s17, 1 }
   0x9   : > { %p714_p4 = por %p41_p1, %p40_p0  ;;  %p399_p5 = scmp.ge.s32.totalorder %s655_s15, 1 }
   0xa   : > { %p719_p6 = por %p112_p3, %p40_p0  ;;  %p119_p7 = scmp.lt.s32.totalorder %s655_s15, 3 }
   0xb   : > { %s130_s22 = sshll.u32 %s829_s1, 4  ;;  %s657_s24 = smov [#allocation5]   ;;  %s131_s22 = int_to_ptr.hbm [resolvable:$true] %s130_s22 }
   0xc   : > { %p727_p8 = pnand %p399_p5, %p119_p7  ;;  %s132_s25 = sshll.u32 %s657_s24, 4  ;;  %s133_s25 = int_to_ptr.vmem [resolvable:$true] %s132_s25 }
   0xd   : > { %s737_s26 = sadd.s32 1, %s655_s15   ;;  %s658_s27 = smov 64  }
   0xe   : > { %p469_p9 = pneg %p727_p8  ;;  %s659_s28 = smov 4  }
   0xf   : > { %s24_s29 = ssub.s32 %s655_s15, %s737_s26  ;;  %s27_s30 = sadd.s32 1, %s651_s14 }
  0x10   : > { %p470_p10 = pnand %p469_p9, %p41_p1  ;;  %p25_p12 = scmp.eq.s32.totalorder %s24_s29, 0 }
  0x11   : > { %p34_p13 = scmp.ne.s32.totalorder %s651_s14, %s647_s13  ;;  %p35_p0 = scmp.eq.s32.totalorder %s655_s15, 0 }
  0x12   : > { %472 = dma.hbm_to_vmem [thread:$0]  (!%p470_p10), %s131_s22, 1024, %s133_s25, [#allocation6], %s658_s27, %s658_s27, %s659_s28  }
  0x13   : > { %p482_p3 = scmp.lt.s32.totalorder %s655_s15, 2  ;;  %p36_p5 = por %p35_p0, %p34_p13 }
  0x14   : > { %s747_s4 = scalar_select %p25_p12, %s651_s14, %s27_s30  }
  0x15   : > { %p751_p7 = por %p106_p2, %p34_p13  ;;  %s149_s6 = sand.u32 1, %s651_s14  }
  0x16   : > { %s446_s7 = sshll.u32 %s655_s15, 4  ;;  %s402_s8 = sshll.u32 %s149_s6, 4 }
  0x17   : > { %s158_s11 = scalar_lea.hbm %s828_s0, %s446_s7  ;;  %s153_s20 = scalar_lea.vmem [#allocation2], %s402_s8 }
  0x18   : > { %s159_s17 = sshll.u32 %s158_s11, 4  ;;  %s161_s21 = sshll.u32 %s153_s20, 4  ;;  %s160_s17 = int_to_ptr.hbm [resolvable:$true] %s159_s17  ;;  %s162_s21 = int_to_ptr.vmem [resolvable:$true] %s161_s21 }
  0x19   : > { %p762_p9 = pnand %p482_p3, %p36_p5  ;;  %s150_s24 = scalar_lea.sflag [#allocation3], %s149_s6 }
  0x1a   : > { %s555_s25 = sshra.s32 %s160_s17, 4  ;;  %s562_s30 = scalar_lea.hbm %s828_s0, 32  ;;  %s556_s25 = int_to_ptr.hbm [resolvable:$true] %s555_s25 }
  0x1b   : > { %s557_s27 = scalar_lea.hbm %s556_s25, 16  ;;  %p559_p10 = pneg %p762_p9 }
  0x1c   : > { %p558_p2 = scmp.ne.s32.totalorder %s556_s25, %s557_s27  ;;  %p563_p0 = scmp.lt.s32.totalorder %s556_s25, %s828_s0 }
  0x1d   : > { %p564_p3 = scmp.lt.s32.totalorder %s562_s30, %s557_s27 }
  0x1e   : > { %p560_p12 = pnand %p559_p10, %p558_p2 }
  0x1f   : > { %p565_p5 = por %p564_p3, %p563_p0 }
  0x20   : > { %p561_p13 = pneg %p560_p12 }
  0x22   : > { %p566_p11 = pnand %p565_p5, %p561_p13 }
  0x24   : > { %569 = shalt.err (!%p566_p11)
}
  0x25   : > { %s660_s6 = smov 128   ;;  %s661_s9 = smov 8  }
  0x26   : > { %476 = dma.hbm_to_vmem [thread:$0]  (!%p762_p9), %s160_s17, 256, %s162_s21, %s150_s24, %s660_s6, %s660_s6, %s661_s9  }
  0x27   : > { %173 = sbr.rel (%p727_p8) target bundleno = 221 (0xdd), region = 32  ;;  %s779_s10 = sand.u32 (!%p727_p8), 1, %s647_s13  }
  0x28   : > { %s406_s11 = sshll.u32 (!%p727_p8), %s779_s10, 4  ;;  %s176_s20 = scalar_lea.sflag (!%p727_p8), [#allocation3], %s779_s10 }
  0x29   : > { %s179_s25 = scalar_lea.vmem (!%p727_p8), [#allocation2], %s406_s11 }
  0x2c   : > { %630 = dma.done.wait (%p714_p4), %s176_s20, 256  }
  0x2d   : > { %632 = vsyncadd (%p714_p4), %s176_s20, 4294967040 }
  0x2e   : > { %634 = dma.done.wait (%p41_p1), [#allocation6], 1024  }
  0x2f   : > { %636 = vsyncadd (%p41_p1), [#allocation6], 4294966272  ;;  %v454_v0 = vld [vmem:[#allocation5 + $0x38] sm:$0xff]  ;;  %v453_v1 = vld [vmem:[#allocation5 + $0x30] sm:$0xff]  ;;  %s408_s18 = sshll.u32 %s779_s10, 3  ;;  %s455_s23 = sshll.u32 %s705_s16, 3 }
  0x30   : > { %281 = vmatpush.bf16.msra.mxu0 %v454_v0  ;;  %v452_v2 = vld [vmem:[#allocation5 + $0x28] sm:$0xff]  ;;  %v451_v3 = vld [vmem:[#allocation5 + $0x20] sm:$0xff]  ;;  %v450_v4 = vld [vmem:[#allocation5 + $0x18] sm:$0xff]  ;;  %s311_s22 = scalar_lea.hbm %s831_s3, %s455_s23  ;;  %s207_s28 = scalar_lea.vmem [#allocation7], %s408_s18 }
  0x31   : > { %v449_v5 = vld [vmem:[#allocation5 + $0x10] sm:$0xff]  ;;  %v448_v6 = vld [vmem:[#allocation5 + $0x8] sm:$0xff]  ;;  %v447_v7 = vld [vmem:[#allocation5] sm:$0xff]  ;;  %s312_s29 = sshll.u32 %s207_s28, 4  ;;  %s314_s30 = sshll.u32 %s311_s22, 4  ;;  %s313_s29 = int_to_ptr.vmem [resolvable:$true] %s312_s29  ;;  %s315_s30 = int_to_ptr.hbm [resolvable:$true] %s314_s30 }
  0x32   : > { %v210_v8 = vld [vmem:[%s179_s25] sm:$0xff]  ;;  %v211_v9 = vld [vmem:[%s179_s25 + $0x8] sm:$0xff]  ;;  %s300_s16 = scalar_lea.sflag [#allocation4], %s779_s10  ;;  %s599_s7 = sshra.s32 %s315_s30, 4  ;;  %s600_s7 = int_to_ptr.hbm [resolvable:$true] %s599_s7 }
  0x33   : > { %v212_v10 = vpack.c.bf16 %v211_v9, %v210_v8  ;;  %v524_v12 = vld [vmem:[%s830_s2] ss:$0 sm:$0xff]  ;;  %s601_s8 = scalar_lea.hbm %s600_s7, 8  ;;  %s605_s11 = scalar_lea.hbm %s831_s3, 16 }
  0x34   : > { %282 = vmatpush.bf16.msra.mxu0 %v453_v1  ;;  %p602_p1 = scmp.ne.s32.totalorder %s600_s7, %s601_s8  ;;  %p606_p11 = scmp.lt.s32.totalorder %s600_s7, %s831_s3 }
  0x35   : > { %p607_p9 = scmp.lt.s32.totalorder %s605_s11, %s601_s8 }
  0x36   : > { %p603_p4 = pnand %p602_p1, %p751_p7 }
  0x37   : > { %p608_p2 = por %p607_p9, %p606_p11 }
  0x38   : > { %283 = vmatpush.bf16.msra.mxu0 %v452_v2  ;;  %p604_p8 = pneg %p603_p4 }
  0x3a   : > { %p609_p10 = pnand %p608_p2, %p604_p8 }
  0x3c   : > { %284 = vmatpush.bf16.msra.mxu0 %v451_v3 }
  0x40   : > { %285 = vmatpush.bf16.msra.mxu0 %v450_v4 }
  0x44   : > { %286 = vmatpush.bf16.msra.mxu0 %v449_v5 }
  0x48   : > { %287 = vmatpush.bf16.msra.mxu0 %v448_v6 }
  0x4c   : > { %288 = vmatpush.bf16.msra.mxu0 %v447_v7 }
  0x4f   : > { %289 = vmatmul.bf16.vlgmr.msra.gmra.mxu0 %v212_v10 }
  0xcc   : > { %v290_v11 = vpop.f32.mrf.mxu0 }
  0xcd   : > { %v291_v14 = vadd.f32 %v524_v12, %v290_v11 }
  0xd4   : > { %v292_v13 = vpop.f32.mrf.mxu0 }
  0xd5   : > { %v293_v15 = vadd.f32 %v524_v12, %v292_v13 }
  0xd7   : > { %v459_v16 = vpack.c.bf16 %v293_v15, %v291_v14 }
  0xd9   : > { %460 = vst [vmem:[%s207_s28] sm:$0xff] %v459_v16  }
  0xda   : > { %612 = shalt.err (!%p609_p10)
}
  0xdb   : > { %s662_s10 = smov 64   ;;  %s663_s18 = smov 4  }
  0xdc   : > { %467 = dma.vmem_to_hbm [thread:$0]  (%p751_p7), %s313_s29, 128, %s315_s30, %s300_s16, %s662_s10, %s662_s10, %s663_s18  }
  0xdd PF: > { %s329_s23 = sand.u32 1, %s643_s12   ;;  %p837_p12 = scmp.ge.s32.totalorder %s655_s15, 2 }
  0xde   : > { %s330_s17 = scalar_lea.sflag [#allocation4], %s329_s23 }
  0xdf   : > { %p478_p13 = pnand %p837_p12, %p719_p6 }
  0xe1   : > { %p479_p0 = pneg %p478_p13 }
  0xe3   : > { %638 = dma.done.wait (%p479_p0), %s330_s17, 128  }
  0xe4   : > { %640 = vsyncadd (%p479_p0), %s330_s17, 4294967168  ;;  %p17_p3 = scmp.ge.s32.totalorder %s737_s26, 4   ;;  %s838_s12 = smov %s647_s13 }
  0xe5   : > { %s839_s13 = smov %s651_s14  ;;  %s840_s14 = smov %s747_s4 }
  0xe6   : > { %s841_s15 = smov %s737_s26  ;;  %19 = sbr.rel (!%p17_p3) target bundleno = 6 (0x6), region = 81 }
  0xeb   :  { %336 = vsyncpa [#allocation3], 1 }
  0xec   :  { %338 = vsyncpa [#allocation3 + $0x1], 1 }
  0xed   :  { %339 = vsyncpa [#allocation6], 1 }
  0xee   :  { %340 = vsyncpa [#allocation4], 1 }
  0xef   :  { %342 = vsyncpa [#allocation4 + $0x1], 1 }

// kernel: tpu_custom_call.1
= control target key start
LH: loop header
LB: loop body
LE: loop exit
PB: predicated region body
PF: predicated region fallthrough
CT: control target
= control target key end

     0   :  { %8 = vsyncpa [#allocation3], 0  ;;  %s828_s0 = inlined_call_operand.hbm [shape: f32[32,128], index: 0, kind: input, shape index: {}]   ;;  %s829_s1 = inlined_call_operand.hbm [shape: bf16[128,128], index: 1, kind: input, shape index: {}]   ;;  %s830_s2 = inlined_call_operand.vmem [shape: f32[1,128], index: 2, kind: input, shape index: {}]   ;;  %s831_s3 = inlined_call_operand.hbm [shape: bf16[32,128], index: 3, kind: output, shape index: {}]  }
   0x1   :  { %10 = vsyncpa [#allocation3 + $0x1], 0 }
   0x2   :  { %11 = vsyncpa [#allocation6], 0 }
   0x3   :  { %12 = vsyncpa [#allocation4], 0 }
   0x4   :  { %14 = vsyncpa [#allocation4 + $0x1], 0  ;;  %s684_s12 = smov 0   ;;  %s686_s13 = smov 0  }
   0x5   :  { %s688_s14 = smov 0   ;;  %s690_s15 = smov 0  }
   0x6 LB: > { %s705_s16 = sadd.s32 4294967295, %s655_s15   ;;  %s398_s17 = sadd.s32 4294967294, %s655_s15   ;;  %s655_s15 = sphi %s690_s15, %s841_s15   ;;  %s651_s14 = sphi %s688_s14, %s840_s14   ;;  %s647_s13 = sphi %s686_s13, %s839_s13   ;;  %s643_s12 = sphi %s684_s12, %s838_s12  }
   0x7   : > { %p40_p0 = scmp.ne.s32.totalorder %s647_s13, %s643_s12  ;;  %p41_p1 = scmp.eq.s32.totalorder %s705_s16, 0 }
   0x8   : > { %p106_p2 = scmp.eq.s32.totalorder %s705_s16, 1  ;;  %p112_p3 = scmp.eq.s32.totalorder %s398_s17, 1 }
   0x9   : > { %p714_p4 = por %p41_p1, %p40_p0  ;;  %p399_p5 = scmp.ge.s32.totalorder %s655_s15, 1 }
   0xa   : > { %p719_p6 = por %p112_p3, %p40_p0  ;;  %p119_p7 = scmp.lt.s32.totalorder %s655_s15, 3 }
   0xb   : > { %s130_s22 = sshll.u32 %s829_s1, 4  ;;  %s657_s24 = smov [#allocation5]   ;;  %s131_s22 = int_to_ptr.hbm [resolvable:$true] %s130_s22 }
   0xc   : > { %p727_p8 = pnand %p399_p5, %p119_p7  ;;  %s132_s25 = sshll.u32 %s657_s24, 4  ;;  %s133_s25 = int_to_ptr.vmem [resolvable:$true] %s132_s25 }
   0xd   : > { %s737_s26 = sadd.s32 1, %s655_s15   ;;  %s658_s27 = smov 64  }
   0xe   : > { %p469_p9 = pneg %p727_p8  ;;  %s659_s28 = smov 4  }
   0xf   : > { %s24_s29 = ssub.s32 %s655_s15, %s737_s26  ;;  %s27_s30 = sadd.s32 1, %s651_s14 }
  0x10   : > { %p470_p10 = pnand %p469_p9, %p41_p1  ;;  %p25_p12 = scmp.eq.s32.totalorder %s24_s29, 0 }
  0x11   : > { %p34_p13 = scmp.ne.s32.totalorder %s651_s14, %s647_s13  ;;  %p35_p0 = scmp.eq.s32.totalorder %s655_s15, 0 }
  0x12   : > { %472 = dma.hbm_to_vmem [thread:$0]  (!%p470_p10), %s131_s22, 1024, %s133_s25, [#allocation6], %s658_s27, %s658_s27, %s659_s28  }
  0x13   : > { %p482_p3 = scmp.lt.s32.totalorder %s655_s15, 2  ;;  %p36_p5 = por %p35_p0, %p34_p13 }
  0x14   : > { %s747_s4 = scalar_select %p25_p12, %s651_s14, %s27_s30  }
  0x15   : > { %p751_p7 = por %p106_p2, %p34_p13  ;;  %s149_s6 = sand.u32 1, %s651_s14  }
  0x16   : > { %s446_s7 = sshll.u32 %s655_s15, 4  ;;  %s402_s8 = sshll.u32 %s149_s6, 4 }
  0x17   : > { %s158_s11 = scalar_lea.hbm %s828_s0, %s446_s7  ;;  %s153_s20 = scalar_lea.vmem [#allocation2], %s402_s8 }
  0x18   : > { %s159_s17 = sshll.u32 %s158_s11, 4  ;;  %s161_s21 = sshll.u32 %s153_s20, 4  ;;  %s160_s17 = int_to_ptr.hbm [resolvable:$true] %s159_s17  ;;  %s162_s21 = int_to_ptr.vmem [resolvable:$true] %s161_s21 }
  0x19   : > { %p762_p9 = pnand %p482_p3, %p36_p5  ;;  %s150_s24 = scalar_lea.sflag [#allocation3], %s149_s6 }
  0x1a   : > { %s555_s25 = sshra.s32 %s160_s17, 4  ;;  %s562_s30 = scalar_lea.hbm %s828_s0, 32  ;;  %s556_s25 = int_to_ptr.hbm [resolvable:$true] %s555_s25 }
  0x1b   : > { %s557_s27 = scalar_lea.hbm %s556_s25, 16  ;;  %p559_p10 = pneg %p762_p9 }
  0x1c   : > { %p558_p2 = scmp.ne.s32.totalorder %s556_s25, %s557_s27  ;;  %p563_p0 = scmp.lt.s32.totalorder %s556_s25, %s828_s0 }
  0x1d   : > { %p564_p3 = scmp.lt.s32.totalorder %s562_s30, %s557_s27 }
  0x1e   : > { %p560_p12 = pnand %p559_p10, %p558_p2 }
  0x1f   : > { %p565_p5 = por %p564_p3, %p563_p0 }
  0x20   : > { %p561_p13 = pneg %p560_p12 }
  0x22   : > { %p566_p11 = pnand %p565_p5, %p561_p13 }
  0x24   : > { %569 = shalt.err (!%p566_p11)
}
  0x25   : > { %s660_s6 = smov 128   ;;  %s661_s9 = smov 8  }
  0x26   : > { %476 = dma.hbm_to_vmem [thread:$0]  (!%p762_p9), %s160_s17, 256, %s162_s21, %s150_s24, %s660_s6, %s660_s6, %s661_s9  }
  0x27   : > { %173 = sbr.rel (%p727_p8) target bundleno = 221 (0xdd), region = 32  ;;  %s779_s10 = sand.u32 (!%p727_p8), 1, %s647_s13  }
  0x28   : > { %s406_s11 = sshll.u32 (!%p727_p8), %s779_s10, 4  ;;  %s176_s20 = scalar_lea.sflag (!%p727_p8), [#allocation3], %s779_s10 }
  0x29   : > { %s179_s25 = scalar_lea.vmem (!%p727_p8), [#allocation2], %s406_s11 }
  0x2c   : > { %630 = dma.done.wait (%p714_p4), %s176_s20, 256  }
  0x2d   : > { %632 = vsyncadd (%p714_p4), %s176_s20, 4294967040 }
  0x2e   : > { %634 = dma.done.wait (%p41_p1), [#allocation6], 1024  }
  0x2f   : > { %636 = vsyncadd (%p41_p1), [#allocation6], 4294966272  ;;  %v454_v0 = vld [vmem:[#allocation5 + $0x38] sm:$0xff]  ;;  %v453_v1 = vld [vmem:[#allocation5 + $0x30] sm:$0xff]  ;;  %s408_s18 = sshll.u32 %s779_s10, 3  ;;  %s455_s23 = sshll.u32 %s705_s16, 3 }
  0x30   : > { %281 = vmatpush.bf16.msra.mxu0 %v454_v0  ;;  %v452_v2 = vld [vmem:[#allocation5 + $0x28] sm:$0xff]  ;;  %v451_v3 = vld [vmem:[#allocation5 + $0x20] sm:$0xff]  ;;  %v450_v4 = vld [vmem:[#allocation5 + $0x18] sm:$0xff]  ;;  %s311_s22 = scalar_lea.hbm %s831_s3, %s455_s23  ;;  %s207_s28 = scalar_lea.vmem [#allocation7], %s408_s18 }
  0x31   : > { %v449_v5 = vld [vmem:[#allocation5 + $0x10] sm:$0xff]  ;;  %v448_v6 = vld [vmem:[#allocation5 + $0x8] sm:$0xff]  ;;  %v447_v7 = vld [vmem:[#allocation5] sm:$0xff]  ;;  %s312_s29 = sshll.u32 %s207_s28, 4  ;;  %s314_s30 = sshll.u32 %s311_s22, 4  ;;  %s313_s29 = int_to_ptr.vmem [resolvable:$true] %s312_s29  ;;  %s315_s30 = int_to_ptr.hbm [resolvable:$true] %s314_s30 }
  0x32   : > { %v210_v8 = vld [vmem:[%s179_s25] sm:$0xff]  ;;  %v211_v9 = vld [vmem:[%s179_s25 + $0x8] sm:$0xff]  ;;  %s300_s16 = scalar_lea.sflag [#allocation4], %s779_s10  ;;  %s599_s7 = sshra.s32 %s315_s30, 4  ;;  %s600_s7 = int_to_ptr.hbm [resolvable:$true] %s599_s7 }
  0x33   : > { %v212_v10 = vpack.c.bf16 %v211_v9, %v210_v8  ;;  %v524_v12 = vld [vmem:[%s830_s2] ss:$0 sm:$0xff]  ;;  %s601_s8 = scalar_lea.hbm %s600_s7, 8  ;;  %s605_s11 = scalar_lea.hbm %s831_s3, 16 }
  0x34   : > { %282 = vmatpush.bf16.msra.mxu0 %v453_v1  ;;  %p602_p1 = scmp.ne.s32.totalorder %s600_s7, %s601_s8  ;;  %p606_p11 = scmp.lt.s32.totalorder %s600_s7, %s831_s3 }
  0x35   : > { %p607_p9 = scmp.lt.s32.totalorder %s605_s11, %s601_s8 }
  0x36   : > { %p603_p4 = pnand %p602_p1, %p751_p7 }
  0x37   : > { %p608_p2 = por %p607_p9, %p606_p11 }
  0x38   : > { %283 = vmatpush.bf16.msra.mxu0 %v452_v2  ;;  %p604_p8 = pneg %p603_p4 }
  0x3a   : > { %p609_p10 = pnand %p608_p2, %p604_p8 }
  0x3c   : > { %284 = vmatpush.bf16.msra.mxu0 %v451_v3 }
  0x40   : > { %285 = vmatpush.bf16.msra.mxu0 %v450_v4 }
  0x44   : > { %286 = vmatpush.bf16.msra.mxu0 %v449_v5 }
  0x48   : > { %287 = vmatpush.bf16.msra.mxu0 %v448_v6 }
  0x4c   : > { %288 = vmatpush.bf16.msra.mxu0 %v447_v7 }
  0x4f   : > { %289 = vmatmul.bf16.vlgmr.msra.gmra.mxu0 %v212_v10 }
  0xcc   : > { %v290_v11 = vpop.f32.mrf.mxu0 }
  0xcd   : > { %v291_v14 = vadd.f32 %v524_v12, %v290_v11 }
  0xd4   : > { %v292_v13 = vpop.f32.mrf.mxu0 }
  0xd5   : > { %v293_v15 = vadd.f32 %v524_v12, %v292_v13 }
  0xd7   : > { %v459_v16 = vpack.c.bf16 %v293_v15, %v291_v14 }
  0xd9   : > { %460 = vst [vmem:[%s207_s28] sm:$0xff] %v459_v16  }
  0xda   : > { %612 = shalt.err (!%p609_p10)
}
  0xdb   : > { %s662_s10 = smov 64   ;;  %s663_s18 = smov 4  }
  0xdc   : > { %467 = dma.vmem_to_hbm [thread:$0]  (%p751_p7), %s313_s29, 128, %s315_s30, %s300_s16, %s662_s10, %s662_s10, %s663_s18  }
  0xdd PF: > { %s329_s23 = sand.u32 1, %s643_s12   ;;  %p837_p12 = scmp.ge.s32.totalorder %s655_s15, 2 }
  0xde   : > { %s330_s17 = scalar_lea.sflag [#allocation4], %s329_s23 }
  0xdf   : > { %p478_p13 = pnand %p837_p12, %p719_p6 }
  0xe1   : > { %p479_p0 = pneg %p478_p13 }
  0xe3   : > { %638 = dma.done.wait (%p479_p0), %s330_s17, 128  }
  0xe4   : > { %640 = vsyncadd (%p479_p0), %s330_s17, 4294967168  ;;  %p17_p3 = scmp.ge.s32.totalorder %s737_s26, 4   ;;  %s838_s12 = smov %s647_s13 }
  0xe5   : > { %s839_s13 = smov %s651_s14  ;;  %s840_s14 = smov %s747_s4 }
  0xe6   : > { %s841_s15 = smov %s737_s26  ;;  %19 = sbr.rel (!%p17_p3) target bundleno = 6 (0x6), region = 81 }
  0xeb   :  { %336 = vsyncpa [#allocation3], 1 }
  0xec   :  { %338 = vsyncpa [#allocation3 + $0x1], 1 }
  0xed   :  { %339 = vsyncpa [#allocation6], 1 }
  0xee   :  { %340 = vsyncpa [#allocation4], 1 }
  0xef   :  { %342 = vsyncpa [#allocation4 + $0x1], 1 }

</bundles_post_ra>
